<compile_context>
chip_gen: v6e
topology: v6e:2x2x1
jax: 0.10.0
libtpu: 0.0.40
codegen_flags: <defaults>
</compile_context>

<pallas_src>
import functools

import jax
import jax.numpy as jnp
import numpy as np
from jax.experimental import pallas as pl
from jax.experimental.pallas import tpu as pltpu

_EPS = 1e-3
_LANES = 128
_MIN_BLOCK_ROWS = 32                      # multiple of sublane pack for u8(32)/bf16(16)/f32(8)
_TARGET_BLOCK_BYTES = 8 * 1024 * 1024     # in_tile + out_tile per grid step (~16 MiB 2x-buffered)
_VMEM_LIMIT_BYTES = 48 * 1024 * 1024      # explicit limit: v5e default scoped VMEM is only 16 MiB
_BYPASS_BYTES = 256 * 1024                # below this, a fused XLA convert beats a pallas_call


def _round_up(x: int, m: int) -> int:
    return ((x + m - 1) // m) * m


def _int_max_value(dtype) -> float:
    dtype = jnp.dtype(dtype)
    if not jnp.issubdtype(dtype, jnp.integer):
        return 1.0
    return float(jnp.iinfo(dtype).max)


def _float_to_int_params(out_dtype):
    info = jnp.iinfo(out_dtype)
    scale = float(info.max) + 1.0 - _EPS
    lo = float(info.min)
    hi = float(np.float32(info.max))
    if hi > float(info.max):               # e.g. int32 max rounds up to 2^31 in f32
        hi = float(np.nextafter(np.float32(hi), np.float32(0.0)))
    return scale, lo, hi


def _int_to_int_params(in_dtype, out_dtype):
    in_max = int(jnp.iinfo(in_dtype).max)
    out_max = int(jnp.iinfo(out_dtype).max)
    if in_max > out_max:
        factor = (in_max + 1) // (out_max + 1)   # always a power of two
        return factor.bit_length() - 1, True
    factor = (out_max + 1) // (in_max + 1)
    return factor.bit_length() - 1, False


# ------------------------------ kernels ------------------------------------


def _int_to_float_kernel(x_ref, o_ref, *, inv_max_in):
    # integer -> float: promote to f32, multiply by the trace-time-folded reciprocal
    # (single VPU mul instead of an EUP divide), cast to the output float dtype.
    x = x_ref[...].astype(jnp.float32)
    o_ref[...] = (x * inv_max_in).astype(o_ref.dtype)


def _float_to_int_kernel(x_ref, o_ref, *, scale, lo, hi):
    # float -> int: multiply in f32 (scale not representable in bf16/f16), clamp to the
    # output integer range to avoid wraparound, truncate-cast.
    x = x_ref[...].astype(jnp.float32)
    o_ref[...] = jnp.clip(x * scale, lo, hi).astype(o_ref.dtype)


def _float_to_float_kernel(x_ref, o_ref):
    # float -> float: bare cast, no scaling, no f32 intermediate.
    o_ref[...] = x_ref[...].astype(o_ref.dtype)


def _int_to_int_kernel(x_ref, o_ref, *, shift, down):
    # int -> int: torchvision rescales by a power-of-two factor; floor-div == arithmetic
    # right shift, up-scale == left shift. Compute in int32 (native VPU width).
    x = x_ref[...].astype(jnp.int32)
    y = (x >> shift) if down else (x << shift)
    o_ref[...] = y.astype(o_ref.dtype)


# ------------------------------ launcher -----------------------------------


def _pick_block_rows(rows: int, in_dtype, out_dtype) -> int:
    if rows <= 2 * _MIN_BLOCK_ROWS:
        # Single grid step; a full-extent block is always layout-legal. (Inputs this small
        # normally take the XLA bypass anyway.)
        return rows
    bytes_per_row = _LANES * (jnp.dtype(in_dtype).itemsize + jnp.dtype(out_dtype).itemsize)
    budget_rows = max(_MIN_BLOCK_ROWS, _TARGET_BLOCK_BYTES // bytes_per_row)
    budget_rows = (budget_rows // _MIN_BLOCK_ROWS) * _MIN_BLOCK_ROWS
    # Keep the grid count >= 2 and even so the "parallel" axis splits evenly across the
    # two v7x TensorCores; balance the per-step work across those steps.
    n_steps = max(2, _round_up(pl.cdiv(rows, budget_rows), 2))
    block_rows = _round_up(pl.cdiv(rows, n_steps), _MIN_BLOCK_ROWS)
    return max(_MIN_BLOCK_ROWS, min(block_rows, budget_rows))


def _run_elementwise(x2d: jax.Array, out_dtype, kernel_fn) -> jax.Array:
    rows, lanes = x2d.shape
    assert lanes == _LANES
    out_dtype = jnp.dtype(out_dtype)
    block_rows = _pick_block_rows(rows, x2d.dtype, out_dtype)
    grid = (pl.cdiv(rows, block_rows),)

    n_elems = rows * lanes
    cost = pl.CostEstimate(
        flops=n_elems,
        transcendentals=0,
        bytes_accessed=n_elems * (jnp.dtype(x2d.dtype).itemsize + out_dtype.itemsize),
    )

    return pl.pallas_call(
        kernel_fn,
        out_shape=jax.ShapeDtypeStruct((rows, _LANES), out_dtype),
        grid_spec=pltpu.PrefetchScalarGridSpec(
            num_scalar_prefetch=0,
            grid=grid,
            in_specs=[pl.BlockSpec((block_rows, _LANES), lambda i: (i, 0))],
            out_specs=pl.BlockSpec((block_rows, _LANES), lambda i: (i, 0)),
        ),
        compiler_params=pltpu.CompilerParams(
            dimension_semantics=("parallel",),
            vmem_limit_bytes=_VMEM_LIMIT_BYTES,
        ),
        cost_estimate=cost,
    )(x2d)


# ------------------------------ dispatch -----------------------------------


def _validate(in_dtype, out_dtype):
    in_f = jnp.issubdtype(in_dtype, jnp.floating)
    out_f = jnp.issubdtype(out_dtype, jnp.floating)
    if in_f and not out_f:
        if (in_dtype == jnp.float32 and (out_dtype == jnp.int32 or out_dtype == jnp.int64)) or (
            in_dtype == jnp.float64 and out_dtype == jnp.int64
        ):
            raise RuntimeError(
                f"The cast from {in_dtype} to {out_dtype} cannot be performed safely."
            )


def _select_kernel(in_dtype, out_dtype):
    in_f = jnp.issubdtype(in_dtype, jnp.floating)
    out_f = jnp.issubdtype(out_dtype, jnp.floating)
    if in_f and out_f:
        return _float_to_float_kernel
    if (not in_f) and out_f:
        return functools.partial(
            _int_to_float_kernel, inv_max_in=1.0 / _int_max_value(in_dtype)
        )
    if in_f and (not out_f):
        scale, lo, hi = _float_to_int_params(out_dtype)
        return functools.partial(_float_to_int_kernel, scale=scale, lo=lo, hi=hi)
    shift, down = _int_to_int_params(in_dtype, out_dtype)
    return functools.partial(_int_to_int_kernel, shift=shift, down=down)


def _convert_with_jnp(image: jax.Array, out_dtype) -> jax.Array:
    # Same math as the kernels, expressed as one fused XLA elementwise op. Used for
    # tiny tensors and for sizes not divisible by 128 (already memory-optimal; avoids
    # the extra pad/slice HBM round trips a lane-dense repack would need).
    in_dtype = jnp.dtype(image.dtype)
    out_dtype = jnp.dtype(out_dtype)
    in_f = jnp.issubdtype(in_dtype, jnp.floating)
    out_f = jnp.issubdtype(out_dtype, jnp.floating)
    if in_f and out_f:
        return image.astype(out_dtype)
    if (not in_f) and out_f:
        return (image.astype(jnp.float32) * (1.0 / _int_max_value(in_dtype))).astype(out_dtype)
    if in_f and (not out_f):
        scale, lo, hi = _float_to_int_params(out_dtype)
        return jnp.clip(image.astype(jnp.float32) * scale, lo, hi).astype(out_dtype)
    shift, down = _int_to_int_params(in_dtype, out_dtype)
    x = image.astype(jnp.int32)
    y = (x >> shift) if down else (x << shift)
    return y.astype(out_dtype)


def convert_image_dtype(image: jax.Array, dtype, *, force_pallas: bool = False) -> jax.Array:
    in_dtype = jnp.dtype(image.dtype)
    out_dtype = jnp.dtype(dtype)
    if in_dtype == out_dtype:
        return image
    _validate(in_dtype, out_dtype)

    total = image.size
    nbytes = total * (in_dtype.itemsize + out_dtype.itemsize)
    lane_aligned = (total % _LANES == 0) and total > 0
    use_pallas = lane_aligned and (force_pallas or nbytes >= _BYPASS_BYTES)

    if not use_pallas:
        return _convert_with_jnp(image, out_dtype)

    kernel = _select_kernel(in_dtype, out_dtype)
    # Zero-copy reshape to a lane-dense (rows, 128) slab; no HBM pad/slice copies.
    x2d = image.reshape((total // _LANES, _LANES))
    y2d = _run_elementwise(x2d, out_dtype, kernel)
    return y2d.reshape(image.shape)


class ConvertImageDtypeV1:
    """JAX/Pallas port of the PyTorch ConvertImageDtypeV1 module."""

    def __init__(self, dtype):
        self.dtype = dtype

    def __call__(self, image, target=None):
        return convert_image_dtype(image, self.dtype), target


if __name__ == "__main__":
    key = jax.random.PRNGKey(0)
    # NCHW uint8 image, small shape.
    image = jax.random.randint(key, (2, 4, 16, 16), 0, 256, dtype=jnp.int32).astype(jnp.uint8)

    # 1) uint8 -> float32 through the module (small input -> fused-XLA bypass path).
    module = ConvertImageDtypeV1(jnp.float32)
    out, tgt = module(image, target=None)
    out = jax.block_until_ready(out)
    ref = image.astype(jnp.float32) / 255.0
    assert out.dtype == jnp.float32 and out.shape == image.shape
    assert bool(jnp.allclose(out, ref, atol=1e-6))

    # 2) Same conversion, forcing the Pallas kernel (single-step grid).
    out_p = jax.block_until_ready(convert_image_dtype(image, jnp.float32, force_pallas=True))
    assert bool(jnp.allclose(out_p, ref, atol=1e-6))

    # 3) float32 -> uint8 round trip via the Pallas kernel.
    back = jax.block_until_ready(convert_image_dtype(out_p, jnp.uint8, force_pallas=True))
    ref_u8 = (out_p * (255.0 + 1.0 - _EPS)).astype(jnp.uint8)
    assert back.dtype == jnp.uint8 and bool(jnp.array_equal(back, ref_u8))
    assert bool(jnp.array_equal(back, image))

    # 4) float32 -> bfloat16 (bare-cast path) via the Pallas kernel.
    out_bf16 = jax.block_until_ready(convert_image_dtype(out_p, jnp.bfloat16, force_pallas=True))
    assert out_bf16.dtype == jnp.bfloat16
    assert bool(jnp.array_equal(out_bf16, out_p.astype(jnp.bfloat16)))

    # 5) uint8 -> int16 (integer up-scale path, factor 128) via the Pallas kernel.
    out_i16 = jax.block_until_ready(convert_image_dtype(image, jnp.int16, force_pallas=True))
    assert out_i16.dtype == jnp.int16
    assert bool(jnp.array_equal(out_i16, image.astype(jnp.int16) * 128))

    # 6) Medium image: takes the Pallas path automatically with an even, balanced grid.
    big = jax.random.randint(
        jax.random.PRNGKey(1), (3, 256, 256), 0, 256, dtype=jnp.int32
    ).astype(jnp.uint8)
    big_out = jax.block_until_ready(convert_image_dtype(big, jnp.float32))
    assert bool(jnp.allclose(big_out, big.astype(jnp.float32) / 255.0, atol=1e-6))

    # 7) Size not divisible by 128: fused-XLA fallback (no pad / slice HBM traffic).
    odd = jax.random.randint(jax.random.PRNGKey(2), (3, 5, 7), 0, 256, dtype=jnp.int32).astype(
        jnp.uint8
    )
    odd_out = jax.block_until_ready(convert_image_dtype(odd, jnp.float32))
    assert bool(jnp.allclose(odd_out, odd.astype(jnp.float32) / 255.0, atol=1e-6))

    print("KERNEL_OK")
</pallas_src>

<mosaic_0001>
module attributes {stable_mosaic.version = 11 : i64} {
  func.func @_int_to_float_kernel(%arg0: i32, %arg1: memref<16x128xi8, #tpu.memory_space<vmem>>, %arg2: memref<16x128xf32, #tpu.memory_space<vmem>>) attributes {dimension_semantics = [#tpu.dimension_semantics<parallel>], iteration_bounds = array<i64: 1>, scalar_prefetch = 0 : i64, scratch_operands = 0 : i64, tpu.core_type = #tpu.core_type<tc>, window_params = [{transform_indices = @transform_0, window_bounds = array<i64: 16, 128>}, {transform_indices = @transform_1, window_bounds = array<i64: 16, 128>}]} {
    %c0 = arith.constant 0 : index
    %c0_0 = arith.constant 0 : index
    %0 = vector.load %arg1[%c0, %c0_0] : memref<16x128xi8, #tpu.memory_space<vmem>>, vector<16x128xi8>
    %1 = arith.uitofp %0 : vector<16x128xi8> to vector<16x128xf32>
    %cst = arith.constant 0.00392156886 : f32
    %2 = vector.broadcast %cst : f32 to vector<16x128xf32>
    %3 = arith.mulf %1, %2 : vector<16x128xf32>
    %c0_1 = arith.constant 0 : index
    %c0_2 = arith.constant 0 : index
    %4 = vector.load %arg2[%c0_1, %c0_2] : memref<16x128xf32, #tpu.memory_space<vmem>>, vector<16x128xf32>
    tpu.vector_store %arg2[%c0_1, %c0_2], %3 {strides = array<i32>} : memref<16x128xf32, #tpu.memory_space<vmem>>, vector<16x128xf32>,
    return
  }
  func.func @transform_0(%arg0: i32) -> (i32, i32) {
    %c0_i32 = arith.constant 0 : i32
    %c0_i32_0 = arith.constant 0 : i32
    return %arg0, %c0_i32 : i32, i32
  }
  func.func @transform_1(%arg0: i32) -> (i32, i32) {
    %c0_i32 = arith.constant 0 : i32
    %c0_i32_0 = arith.constant 0 : i32
    return %arg0, %c0_i32 : i32, i32
  }
}

</mosaic_0001>

<bundles_post_ra>
// kernel: tpu_custom_call.1
= control target key start
LH: loop header
LB: loop body
LE: loop exit
PB: predicated region body
PF: predicated region fallthrough
CT: control target
= control target key end

     0   :  { %6 = vsyncpa [#allocation3], 0  ;;  %s128_s0 = inlined_call_operand.hbm [shape: u8[16,128], index: 0, kind: input, shape index: {}]   ;;  %s129_s1 = inlined_call_operand.hbm [shape: f32[16,128], index: 1, kind: output, shape index: {}]  }
   0x1   :  { %7 = vsyncpa [#allocation4], 0  ;;  %s106_s6 = smov [#allocation2]  }
   0x2   :  { %s13_s7 = sshll.u32 %s106_s6, 4  ;;  %s14_s7 = int_to_ptr.vmem [resolvable:$true] %s13_s7 }
   0x3   :  { %s70_s8 = scalar_lea.vmem %s14_s7, 64  ;;  %p75_p1 = scmp.lt.s32.totalorder %s14_s7, %s14_s7 }
   0x4   :  { %p71_p0 = scmp.ne.s32.totalorder %s14_s7, %s70_s8  ;;  %p76_p2 = scmp.lt.s32.totalorder %s70_s8, %s70_s8 }
   0x6   :  { %p77_p3 = por %p76_p2, %p75_p1 }
   0x8   :  { %p78_p4 = pnand %p77_p3, %p71_p0 }
   0xa   :  { %81 = shalt.err (!%p78_p4)
}
   0xb   :  { %s107_s9 = smov 32   ;;  %s108_s10 = smov 2  }
   0xc   :  { %19 = dma.hbm_to_vmem [thread:$0]  %s128_s0, 64, %s14_s7, [#allocation3], %s107_s9, %s107_s9, %s108_s10  }
   0xd   :  { %102 = dma.done.wait [#allocation3], 64  }
   0xe   :  { %103 = vsyncadd [#allocation3], 4294967232  ;;  %v53_v0 = vld [vmem:[#allocation2] sm:$0xf]   ;;  %s109_s13 = smov [#allocation5]  }
   0xf   :  { %v54_v1 = vunpack.c.0.s8 %v53_v0  ;;  %v55_v2 = vunpack.c.1.s8 %v53_v0  ;;  %s40_s14 = sshll.u32 %s109_s13, 4  ;;  %s41_s14 = int_to_ptr.vmem [resolvable:$true] %s40_s14 }
  0x10   :  { %s82_s15 = scalar_lea.vmem %s41_s14, 256  ;;  %p87_p6 = scmp.lt.s32.totalorder %s41_s14, %s41_s14 }
  0x11   :  { %v27_v3 = vand.u32 255, %v54_v1  ;;  %v28_v4 = vand.u32 255, %v55_v2  ;;  %p83_p5 = scmp.ne.s32.totalorder %s41_s14, %s82_s15  ;;  %p88_p7 = scmp.lt.s32.totalorder %s82_s15, %s82_s15 }
  0x13   :  { %v29_v5 = vcvt.s32.f32 %v27_v3  ;;  %v30_v6 = vcvt.s32.f32 %v28_v4  ;;  %p89_p8 = por %p88_p7, %p87_p6 }
  0x15   :  { %v31_v7 = vmul.f32 0.003921569, %v29_v5  ;;  %v32_v8 = vmul.f32 0.003921569, %v30_v6  ;;  %p90_p9 = pnand %p89_p8, %p83_p5 }
  0x17   :  { %33 = vst [vmem:[#allocation5] sm:$0xff] %v31_v7  ;;  %34 = vst [vmem:[#allocation5 + $0x8] sm:$0xff] %v32_v8 }
  0x18   :  { %93 = shalt.err (!%p90_p9)
}
  0x19   :  { %s110_s0 = smov 128   ;;  %s111_s16 = smov 8  }
  0x1a   :  { %46 = dma.vmem_to_hbm [thread:$0]  %s41_s14, 256, %s129_s1, [#allocation4], %s110_s0, %s110_s0, %s111_s16  }
  0x1b   :  { %104 = dma.done.wait [#allocation4], 256  }
  0x1c   :  { %105 = vsyncadd [#allocation4], 4294967040 }
  0x1d   :  { %50 = vsyncpa [#allocation3], 1 }
  0x1e   :  { %51 = vsyncpa [#allocation4], 1 }

</bundles_post_ra>
